<compile_context>
chip_gen: v7x
topology: tpu7x:2x2x1
jax: 0.10.0
libtpu: 0.0.40
codegen_flags: <defaults>
</compile_context>

<pallas_src>
import jax
import jax.numpy as jnp
from jax.experimental import pallas as pl
from jax.experimental.pallas import tpu as pltpu


def _rpl_kernel_scratch_acc(x_ref, w_ref, b_ref, o_ref, acc_ref):
    """Output dtype narrower than f32: accumulate in an f32 VMEM scratch."""
    k = pl.program_id(2)

    @pl.when(k == 0)
    def _():
        acc_ref[...] = jnp.zeros_like(acc_ref)

    # partial product for this K tile (this is the "row-parallel partial matmul")
    acc_ref[...] += jnp.dot(x_ref[...], w_ref[...],
                            preferred_element_type=jnp.float32)

    @pl.when(k == pl.num_programs(2) - 1)
    def _():
        # reduce_from_tensor_model_parallel_region result + bias
        o_ref[...] = (acc_ref[...] + b_ref[...].astype(jnp.float32)).astype(o_ref.dtype)


def _rpl_kernel_out_acc(x_ref, w_ref, b_ref, o_ref):
    """f32 output: accumulate directly into the K-resident output block (saves VMEM)."""
    k = pl.program_id(2)

    @pl.when(k == 0)
    def _():
        o_ref[...] = jnp.zeros_like(o_ref)

    o_ref[...] += jnp.dot(x_ref[...], w_ref[...],
                          preferred_element_type=jnp.float32)

    @pl.when(k == pl.num_programs(2) - 1)
    def _():
        o_ref[...] += b_ref[...].astype(o_ref.dtype)


def _pick_tile(dim, pref, align):
    """Largest `align`-multiple tile <= pref that divides dim; full extent if dim small."""
    if dim <= pref:
        return dim  # block == full array dim is always legal
    t = (pref // align) * align
    while t >= align:
        if dim % t == 0:
            return t
        t -= align
    return dim


def row_parallel_linear(x, weight, bias=None, *, tp=1, skip_bias_add=False,
                        tm=256, tn=256, tk=512, compute_dtype=jnp.bfloat16):
    """y = x @ weight.T (+ bias). Row-parallel reduction realized on the K grid axis."""
    orig_shape = x.shape
    K = orig_shape[-1]
    N, Kw = weight.shape
    assert Kw == K, "weight must be [out_features, in_features]"
    assert K % tp == 0, "in_features must be divisible by tp (row-parallel split)"

    M = 1
    for d in orig_shape[:-1]:
        M *= d
    out_dtype = x.dtype

    add_bias = (bias is not None) and (not skip_bias_add)
    b_arr = bias if add_bias else jnp.zeros((N,), dtype=jnp.float32)

    # tile selection (multiples of (8, 128) or full extent)
    tm = _pick_tile(M, tm, 8)
    tn = _pick_tile(N, tn, 128)
    tk = _pick_tile(K, tk, 128)
    grid = (M // tm, N // tn, K // tk)  # K (reduction) last

    # MXU-friendly operands: bf16 x, bf16 W pre-transposed to [K, N] (one-time, HBM-side)
    x2d = x.reshape(M, K).astype(compute_dtype)
    w_t = weight.T.astype(compute_dtype)           # [K, N]
    b2d = b_arr.reshape(1, N).astype(jnp.float32)

    use_scratch = jnp.dtype(out_dtype) != jnp.dtype(jnp.float32)
    kernel = _rpl_kernel_scratch_acc if use_scratch else _rpl_kernel_out_acc
    scratch = [pltpu.VMEM((tm, tn), jnp.float32)] if use_scratch else []

    in_b = jnp.dtype(compute_dtype).itemsize
    out_b = jnp.dtype(out_dtype).itemsize
    vmem_need = (2 * (tm * tk + tk * tn) * in_b        # double-buffered x & W tiles
                 + 2 * tn * 4                          # bias tile
                 + 2 * tm * tn * out_b                 # double-buffered output tile
                 + (tm * tn * 4 if use_scratch else 0))
    vmem_limit = int(min(2 * vmem_need + (4 << 20), 100 << 20))

    cost = pl.CostEstimate(
        flops=2 * M * N * K,
        transcendentals=0,
        bytes_accessed=M * K * in_b + K * N * in_b + M * N * out_b + N * 4,
    )

    out = pl.pallas_call(
        kernel,
        out_shape=jax.ShapeDtypeStruct((M, N), out_dtype),
        grid_spec=pltpu.PrefetchScalarGridSpec(
            num_scalar_prefetch=0,
            grid=grid,
            in_specs=[
                pl.BlockSpec((tm, tk), lambda i, j, k: (i, k)),  # x tile
                pl.BlockSpec((tk, tn), lambda i, j, k: (k, j)),  # W^T tile ([K, N])
                pl.BlockSpec((1, tn), lambda i, j, k: (0, j)),   # bias tile
            ],
            out_specs=pl.BlockSpec((tm, tn), lambda i, j, k: (i, j)),
            scratch_shapes=scratch,
        ),
        compiler_params=pltpu.CompilerParams(
            dimension_semantics=("parallel", "parallel", "arbitrary"),
            vmem_limit_bytes=vmem_limit,
        ),
        cost_estimate=cost,
    )(x2d, w_t, b2d)

    y = out.reshape(*orig_shape[:-1], N)
    if skip_bias_add:
        return y, bias  # mirror the module's (output, output_bias) behavior
    return y


if __name__ == "__main__":
    # small, tile-friendly shapes
    batch, seq = 2, 8            # M = 16
    in_features = 256            # K (split across tp=2 -> 128 per "rank")
    out_features = 128           # N
    tp = 2

    key = jax.random.PRNGKey(0)
    kx, kw, kb = jax.random.split(key, 3)

    x = jax.random.normal(kx, (batch, seq, in_features), dtype=jnp.float32)
    weight = jax.random.normal(kw, (out_features, in_features), dtype=jnp.float32) * 0.02
    bias = jax.random.normal(kb, (out_features,), dtype=jnp.float32) * 0.02

    y = row_parallel_linear(x, weight, bias, tp=tp)
    y = jax.block_until_ready(y)
    assert y.shape == (batch, seq, out_features)

    # reference matching the in-kernel numerics (bf16 MXU inputs, f32 accumulation)
    x_bf = x.astype(jnp.bfloat16)
    w_bf = weight.astype(jnp.bfloat16)
    y_ref = jnp.einsum("bsk,nk->bsn", x_bf, w_bf,
                       preferred_element_type=jnp.float32) + bias
    assert jnp.allclose(y, y_ref, atol=1e-3, rtol=1e-3), "mismatch vs bf16 reference"

    # sanity check vs full-f32 reference (looser: bf16 input rounding)
    y_ref_f32 = jnp.einsum("bsk,nk->bsn", x, weight) + bias
    assert jnp.allclose(y, y_ref_f32, atol=3e-2, rtol=3e-2), "mismatch vs f32 reference"

    print("KERNEL_OK")
</pallas_src>

<mosaic_0001>
module attributes {stable_mosaic.version = 11 : i64} {
  func.func @_rpl_kernel_out_acc(%arg0: i32, %arg1: i32, %arg2: i32, %arg3: memref<16x256xbf16, #tpu.memory_space<vmem>>, %arg4: memref<256x128xbf16, #tpu.memory_space<vmem>>, %arg5: memref<1x128xf32, #tpu.memory_space<vmem>>, %arg6: memref<16x128xf32, #tpu.memory_space<vmem>>) attributes {dimension_semantics = [#tpu.dimension_semantics<parallel>, #tpu.dimension_semantics<parallel>, #tpu.dimension_semantics<arbitrary>], iteration_bounds = array<i64: 1, 1, 1>, scalar_prefetch = 0 : i64, scratch_operands = 0 : i64, tpu.core_type = #tpu.core_type<tc>, window_params = [{transform_indices = @transform_0, window_bounds = array<i64: 16, 256>}, {transform_indices = @transform_1, window_bounds = array<i64: 256, 128>}, {transform_indices = @transform_2, window_bounds = array<i64: 1, 128>}, {transform_indices = @transform_3, window_bounds = array<i64: 16, 128>}]} {
    %c0_i32 = arith.constant 0 : i32
    %0 = arith.cmpi eq, %arg2, %c0_i32 : i32
    %1 = arith.extui %0 : i1 to i32
    %c0_i32_0 = arith.constant 0 : i32
    %2 = arith.cmpi ne, %1, %c0_i32_0 : i32
    scf.if %2 {
      %cst_10 = arith.constant 0.000000e+00 : f32
      %12 = vector.broadcast %cst_10 : f32 to vector<16x128xf32>
      %c0_11 = arith.constant 0 : index
      %c0_12 = arith.constant 0 : index
      %13 = vector.load %arg6[%c0_11, %c0_12] : memref<16x128xf32, #tpu.memory_space<vmem>>, vector<16x128xf32>
      tpu.vector_store %arg6[%c0_11, %c0_12], %12 {strides = array<i32>} : memref<16x128xf32, #tpu.memory_space<vmem>>, vector<16x128xf32>,
    } else {
    }
    %c0 = arith.constant 0 : index
    %c0_1 = arith.constant 0 : index
    %3 = vector.load %arg6[%c0, %c0_1] : memref<16x128xf32, #tpu.memory_space<vmem>>, vector<16x128xf32>
    %c0_2 = arith.constant 0 : index
    %c0_3 = arith.constant 0 : index
    %4 = vector.load %arg3[%c0_2, %c0_3] : memref<16x256xbf16, #tpu.memory_space<vmem>>, vector<16x256xbf16>
    %c0_4 = arith.constant 0 : index
    %c0_5 = arith.constant 0 : index
    %5 = vector.load %arg4[%c0_4, %c0_5] : memref<256x128xbf16, #tpu.memory_space<vmem>>, vector<256x128xbf16>
    %cst = arith.constant dense<0.000000e+00> : vector<16x128xf32>
    %6 = tpu.matmul %4, %5, %cst {dimension_numbers = #tpu.dot_dimension_numbers<[1], [0], [0], [1], [0, 0, 1, 1], [], []>} : vector<16x256xbf16>, vector<256x128xbf16>, vector<16x128xf32> -> vector<16x128xf32>
    %7 = arith.addf %3, %6 : vector<16x128xf32>
    %c0_6 = arith.constant 0 : index
    %c0_7 = arith.constant 0 : index
    %8 = vector.load %arg6[%c0_6, %c0_7] : memref<16x128xf32, #tpu.memory_space<vmem>>, vector<16x128xf32>
    tpu.vector_store %arg6[%c0_6, %c0_7], %7 {strides = array<i32>} : memref<16x128xf32, #tpu.memory_space<vmem>>, vector<16x128xf32>,
    %c0_i32_8 = arith.constant 0 : i32
    %9 = arith.cmpi eq, %arg2, %c0_i32_8 : i32
    %10 = arith.extui %9 : i1 to i32
    %c0_i32_9 = arith.constant 0 : i32
    %11 = arith.cmpi ne, %10, %c0_i32_9 : i32
    scf.if %11 {
      %c0_10 = arith.constant 0 : index
      %c0_11 = arith.constant 0 : index
      %12 = vector.load %arg6[%c0_10, %c0_11] : memref<16x128xf32, #tpu.memory_space<vmem>>, vector<16x128xf32>
      %c0_12 = arith.constant 0 : index
      %c0_13 = arith.constant 0 : index
      %13 = vector.load %arg5[%c0_12, %c0_13] : memref<1x128xf32, #tpu.memory_space<vmem>>, vector<1x128xf32>
      %14 = vector.broadcast %13 : vector<1x128xf32> to vector<16x128xf32>
      %15 = arith.addf %12, %14 : vector<16x128xf32>
      %c0_14 = arith.constant 0 : index
      %c0_15 = arith.constant 0 : index
      %16 = vector.load %arg6[%c0_14, %c0_15] : memref<16x128xf32, #tpu.memory_space<vmem>>, vector<16x128xf32>
      tpu.vector_store %arg6[%c0_14, %c0_15], %15 {strides = array<i32>} : memref<16x128xf32, #tpu.memory_space<vmem>>, vector<16x128xf32>,
    } else {
    }
    return
  }
  func.func @transform_0(%arg0: i32, %arg1: i32, %arg2: i32) -> (i32, i32) {
    %c0_i32 = arith.constant 0 : i32
    return %arg0, %arg2 : i32, i32
  }
  func.func @transform_1(%arg0: i32, %arg1: i32, %arg2: i32) -> (i32, i32) {
    %c0_i32 = arith.constant 0 : i32
    return %arg2, %arg1 : i32, i32
  }
  func.func @transform_2(%arg0: i32, %arg1: i32, %arg2: i32) -> (i32, i32) {
    %c0_i32 = arith.constant 0 : i32
    %c0_i32_0 = arith.constant 0 : i32
    return %c0_i32, %arg1 : i32, i32
  }
  func.func @transform_3(%arg0: i32, %arg1: i32, %arg2: i32) -> (i32, i32) {
    %c0_i32 = arith.constant 0 : i32
    return %arg0, %arg1 : i32, i32
  }
}

</mosaic_0001>

<bundles_post_ra>
// kernel: tpu_custom_call.1
= control target key start
LH: loop header
LB: loop body
LE: loop exit
PB: predicated region body
PF: predicated region fallthrough
CT: control target
= control target key end

     0   :  { %8 = vsyncpa [#allocation3], 0  ;;  %s483_s0 = inlined_call_operand.hbm [shape: bf16[16,256], index: 0, kind: input, shape index: {}]   ;;  %s484_s1 = inlined_call_operand.hbm [shape: bf16[256,128], index: 1, kind: input, shape index: {}]   ;;  %s485_s2 = inlined_call_operand.vmem [shape: f32[1,128], index: 2, kind: input, shape index: {}]   ;;  %s486_s3 = inlined_call_operand.hbm [shape: f32[16,128], index: 3, kind: output, shape index: {}]  }
   0x1   :  { %9 = vsyncpa [#allocation6], 0 }
   0x2   :  { %10 = vsyncpa [#allocation4], 0  ;;  %s411_s12 = smov [#allocation2]   ;;  %s339_s16 = scalar_lea.hbm %s483_s0, 256 }
   0x3   :  { %s16_s13 = sshll.u32 %s411_s12, 4  ;;  %p340_p0 = scmp.ne.s32.totalorder %s483_s0, %s339_s16  ;;  %s17_s13 = int_to_ptr.vmem [resolvable:$true] %s16_s13 }
   0x4   :  { %p343_p1 = scmp.lt.u32.totalorder %s339_s16, %s483_s0 }
   0x6   :  { %p345_p2 = pnand %p343_p1, %p340_p0 }
   0x8   :  { %348 = shalt.err (!%p345_p2)
}
   0x9   :  { %s349_s21 = scalar_lea.vmem %s17_s13, 256  ;;  %p354_p4 = scmp.lt.s32.totalorder %s17_s13, %s17_s13 }
   0xa   :  { %p350_p3 = scmp.ne.s32.totalorder %s17_s13, %s349_s21  ;;  %p355_p5 = scmp.lt.s32.totalorder %s349_s21, %s349_s21 }
   0xc   :  { %p356_p6 = por %p355_p5, %p354_p4 }
   0xe   :  { %p357_p7 = pnand %p356_p6, %p350_p3 }
  0x10   :  { %360 = shalt.err (!%p357_p7)
}
  0x11   :  { %s412_s22 = smov 128   ;;  %s413_s23 = smov 8  }
  0x12   :  { %22 = dma.hbm_to_vmem [thread:$0]  %s483_s0, 256, %s17_s13, [#allocation3], %s412_s22, %s412_s22, %s413_s23  }
  0x13   :  { %s414_s26 = smov [#allocation5]   ;;  %s361_s30 = scalar_lea.hbm %s484_s1, 2048 }
  0x14   :  { %s28_s27 = sshll.u32 %s414_s26, 4  ;;  %p362_p8 = scmp.ne.s32.totalorder %s484_s1, %s361_s30  ;;  %s29_s27 = int_to_ptr.vmem [resolvable:$true] %s28_s27 }
  0x15   :  { %p365_p9 = scmp.lt.u32.totalorder %s361_s30, %s484_s1 }
  0x17   :  { %p367_p10 = pnand %p365_p9, %p362_p8 }
  0x19   :  { %370 = shalt.err (!%p367_p10)
}
  0x1a   :  { %s371_s8 = scalar_lea.vmem %s29_s27, 2048  ;;  %p376_p12 = scmp.lt.s32.totalorder %s29_s27, %s29_s27 }
  0x1b   :  { %p372_p11 = scmp.ne.s32.totalorder %s29_s27, %s371_s8  ;;  %p377_p13 = scmp.lt.s32.totalorder %s371_s8, %s371_s8 }
  0x1d   :  { %p378_p0 = por %p377_p13, %p376_p12 }
  0x1f   :  { %p379_p1 = pnand %p378_p0, %p372_p11 }
  0x21   :  { %382 = shalt.err (!%p379_p1)
}
  0x22   :  { %s415_s0 = smov 64   ;;  %s416_s9 = smov 4  }
  0x23   :  { %34 = dma.hbm_to_vmem [thread:$0]  %s484_s1, 2048, %s29_s27, [#allocation6], %s415_s0, %s415_s0, %s416_s9  }
  0x24   :  { %405 = dma.done.wait [#allocation3], 256  }
  0x25   :  { %406 = vsyncadd [#allocation3], 4294967040 }
  0x26   :  { %407 = dma.done.wait [#allocation6], 2048  }
  0x27   :  { %408 = vsyncadd [#allocation6], 4294965248  ;;  %v320_v0 = vld [vmem:[#allocation5 + $0x40] sm:$0xff]   ;;  %v322_v2 = vld [vmem:[#allocation5 + $0x48] sm:$0xff]   ;;  %s417_s13 = smov [#allocation7]  }
  0x28   :  { %v321_v1 = vld [vmem:[#allocation5] sm:$0xff]   ;;  %290 = vmatprep.subr.bf16.mxu0 %v320_v0  ;;  %v323_v3 = vld [vmem:[#allocation5 + $0x8] sm:$0xff]   ;;  %v324_v4 = vld [vmem:[#allocation5 + $0x50] sm:$0xff]   ;;  %s258_s14 = sshll.u32 %s417_s13, 4  ;;  %s259_s14 = int_to_ptr.vmem [resolvable:$true] %s258_s14 }
  0x29   :  { %291 = vmatpush3.bf16.msra.mxu0 %v321_v1  ;;  %v325_v5 = vld [vmem:[#allocation5 + $0x10] sm:$0xff]   ;;  %v326_v6 = vld [vmem:[#allocation5 + $0x58] sm:$0xff]   ;;  %v328_v8 = vld [vmem:[#allocation5 + $0x60] sm:$0xff]   ;;  %s383_s15 = scalar_lea.vmem %s259_s14, 256  ;;  %p388_p3 = scmp.lt.s32.totalorder %s259_s14, %s259_s14 }
  0x2a   :  { %292 = vmatprep.subr.bf16.mxu0 %v322_v2  ;;  %v327_v7 = vld [vmem:[#allocation5 + $0x18] sm:$0xff]   ;;  %v329_v9 = vld [vmem:[#allocation5 + $0x20] sm:$0xff]   ;;  %v330_v10 = vld [vmem:[#allocation5 + $0x68] sm:$0xff]   ;;  %p384_p2 = scmp.ne.s32.totalorder %s259_s14, %s383_s15  ;;  %p389_p4 = scmp.lt.s32.totalorder %s383_s15, %s383_s15 }
  0x2b   :  { %v338_v11 = vld [vmem:[#allocation2 + $0x4] ss:$8 sps:$4 sm:$0xff]   ;;  %v331_v12 = vld [vmem:[#allocation5 + $0x28] sm:$0xff]   ;;  %v336_v17 = vld [vmem:[#allocation2] ss:$8 sps:$4 sm:$0xff]  }
  0x2c   :  { %224 = vmatprep.mubr.bf16.mxu0 %v338_v11  ;;  %v332_v13 = vld [vmem:[#allocation5 + $0x70] sm:$0xff]   ;;  %v334_v15 = vld [vmem:[#allocation5 + $0x78] sm:$0xff]   ;;  %p390_p5 = por %p389_p4, %p388_p3 }
  0x2d   :  { %293 = vmatpush3.bf16.msra.mxu0 %v323_v3  ;;  %v333_v14 = vld [vmem:[#allocation5 + $0x30] sm:$0xff]   ;;  %v335_v16 = vld [vmem:[#allocation5 + $0x38] sm:$0xff]  }
  0x2e   :  { %294 = vmatprep.subr.bf16.mxu0 %v324_v4  ;;  %v289_v23 = vld [vmem:[%s485_s2] ss:$0 sm:$0xff]  ;;  %p391_p6 = pnand %p390_p5, %p384_p2 }
  0x31   :  { %295 = vmatpush3.bf16.msra.mxu0 %v325_v5 }
  0x32   :  { %296 = vmatprep.subr.bf16.mxu0 %v326_v6 }
  0x35   :  { %297 = vmatpush3.bf16.msra.mxu0 %v327_v7 }
  0x36   :  { %298 = vmatprep.subr.bf16.mxu0 %v328_v8 }
  0x39   :  { %299 = vmatpush3.bf16.msra.mxu0 %v329_v9 }
  0x3a   :  { %300 = vmatprep.subr.bf16.mxu0 %v330_v10 }
  0x3d   :  { %301 = vmatpush3.bf16.msra.mxu0 %v331_v12 }
  0x3e   :  { %302 = vmatprep.subr.bf16.mxu0 %v332_v13 }
  0x41   :  { %303 = vmatpush3.bf16.msra.mxu0 %v333_v14 }
  0x42   :  { %304 = vmatprep.subr.bf16.mxu0 %v334_v15 }
  0x45   :  { %305 = vmatpush3.bf16.msra.mxu0 %v335_v16 }
  0x48   :  { %225 = vmatmul.mubr.bf16.vlgmr.msra.gmra.mrb[0].mxu0 %v336_v17 }
 0x11b   :  { %v306_v18 = vpop.f32.mrb[0].mxu0 }
 0x11c   :  { %v307_v19 = vpop.f32.mrb[1].mxu0 }
 0x11d   :  { %v308_v20 = vadd.f32 %v307_v19, %v306_v18  ;;  %v309_v21 = vpop.f32.mrb[2].mxu0 }
 0x11e   :  { %v310_v22 = vpop.f32.mrb[3].mxu0 }
 0x11f   :  { %v311_v24 = vadd.f32 %v310_v22, %v309_v21  ;;  %v249_v25 = vadd.f32 %v308_v20, %v289_v23 }
 0x121   :  { %v250_v26 = vadd.f32 %v311_v24, %v289_v23  ;;  %251 = vst [vmem:[#allocation7] sm:$0xff] %v249_v25 }
 0x123   :  { %252 = vst [vmem:[#allocation7 + $0x8] sm:$0xff] %v250_v26 }
 0x124   :  { %394 = shalt.err (!%p391_p6)
}
 0x125   :  { %s395_s18 = scalar_lea.hbm %s486_s3, 256 }
 0x126   :  { %p396_p7 = scmp.ne.s32.totalorder %s486_s3, %s395_s18  ;;  %p399_p8 = scmp.lt.u32.totalorder %s395_s18, %s486_s3 }
 0x128   :  { %p401_p9 = pnand %p399_p8, %p396_p7 }
 0x12a   :  { %404 = shalt.err (!%p401_p9)
}
 0x12b   :  { %264 = dma.vmem_to_hbm [thread:$0]  %s259_s14, 256, %s486_s3, [#allocation4], %s412_s22, %s412_s22, %s413_s23  }
 0x12c   :  { %409 = dma.done.wait [#allocation4], 256  }
 0x12d   :  { %410 = vsyncadd [#allocation4], 4294967040 }
 0x12e   :  { %268 = vsyncpa [#allocation3], 1 }
 0x12f   :  { %269 = vsyncpa [#allocation6], 1 }
 0x130   :  { %270 = vsyncpa [#allocation4], 1 }

</bundles_post_ra>
